<compile_context>
chip_gen: v6e
topology: v6e:2x2x1
jax: 0.10.0
libtpu: 0.0.40
codegen_flags: <defaults>
</compile_context>

<pallas_src>
import functools

import jax
import jax.numpy as jnp
import numpy as np
from jax.experimental import pallas as pl
from jax.experimental.pallas import tpu as pltpu


# ----------------------------- Pallas kernel ---------------------------------
def rnn_kernel(
    x_ref,        # (L*Bp, D_in)   time-major flattened input
    wih0_ref,     # (D_in, H)      layer-0 input weights (transposed)
    wihr_ref,     # (max(NL-1,1), H, H) layer>0 input weights (transposed; dummy if NL==1)
    whh_ref,      # (NL, H, H)     hidden weights (transposed)
    b_ref,        # (NL, H)        combined bias (b_ih + b_hh)
    f1w_ref,      # (H, I)         fc1 weight (transposed)
    f1b_ref,      # (1, I)         fc1 bias
    f2w_ref,      # (I, 2*O)       fc2 weight (transposed)
    f2b_ref,      # (1, 2*O)       fc2 bias
    out_ref,      # (Bp, 2*O)      logits at the final timestep
    buf_ref,      # scratch VMEM (L*Bp, H): input projection / hidden sequence
    *,
    num_layers: int,
    seq_len: int,
    batch: int,
    hidden: int,
):
    L = seq_len
    Bp = batch
    H = hidden

    # ---- layer 0: input projection for ALL timesteps as one GEMM ------------
    buf_ref[...] = (
        jnp.dot(x_ref[...], wih0_ref[...], preferred_element_type=jnp.float32)
        + b_ref[0:1, :]
    )

    h0 = jnp.zeros((Bp, H), jnp.float32)

    def recurrence(whh):
        # serial part only: h_t = tanh(xp[t] + h_{t-1} @ W_hh^T)
        # hidden states overwrite the projection buffer in place.
        def step(t, h):
            row = t * Bp                                   # Bp is a multiple of 8
            xp_t = buf_ref[pl.ds(row, Bp), :]              # (Bp, H)
            h_new = jnp.tanh(
                xp_t + jnp.dot(h, whh, preferred_element_type=jnp.float32)
            )
            buf_ref[pl.ds(row, Bp), :] = h_new
            return h_new

        return jax.lax.fori_loop(0, L, step, h0, unroll=True)

    h_last = recurrence(whh_ref[0])

    # ---- layers 1 .. NL-1: batched projection of previous layer's sequence --
    for l in range(1, num_layers):
        seq = buf_ref[...]                                 # (L*Bp, H)
        buf_ref[...] = (
            jnp.dot(seq, wihr_ref[l - 1], preferred_element_type=jnp.float32)
            + b_ref[l:l + 1, :]
        )
        h_last = recurrence(whh_ref[l])

    # ---- fc1 -> fc2 on the final timestep's hidden state ---------------------
    y1 = jnp.dot(h_last, f1w_ref[...], preferred_element_type=jnp.float32) + f1b_ref[...]
    y2 = jnp.dot(y1, f2w_ref[...], preferred_element_type=jnp.float32) + f2b_ref[...]
    out_ref[...] = y2


# ------------------------------ wrapper ---------------------------------------
def rnn_model_forward(x, params, *, hidden_dim, output_dim, num_layers):
    """x: (B, L, D_in) float32 -> logits: (B, output_dim, 2)"""
    B, L, D_in = x.shape
    H = hidden_dim
    I = hidden_dim // 2
    O2 = 2 * output_dim

    # pad the batch to a multiple of 8 so the sublane dimension is filled
    Bp = ((B + 7) // 8) * 8
    if Bp != B:
        x = jnp.pad(x, ((0, Bp - B), (0, 0), (0, 0)))

    # time-major flatten: (Bp, L, D) -> (L, Bp, D) -> (L*Bp, D)
    x2 = jnp.transpose(x, (1, 0, 2)).reshape(L * Bp, D_in)

    wih0_t = params["w_ih"][0].T                           # (D_in, H)
    if num_layers > 1:
        wihr_t = jnp.stack([params["w_ih"][l].T for l in range(1, num_layers)])
    else:
        wihr_t = jnp.zeros((1, H, H), jnp.float32)         # dummy, never read
    nwr = wihr_t.shape[0]
    whh_t = jnp.stack([params["w_hh"][l].T for l in range(num_layers)])      # (NL, H, H)
    b = jnp.stack(
        [params["b_ih"][l] + params["b_hh"][l] for l in range(num_layers)]
    )                                                      # (NL, H)
    f1w_t = params["fc1_w"].T                              # (H, I)
    f1b = params["fc1_b"].reshape(1, I)
    f2w_t = params["fc2_w"].T                              # (I, 2*O)
    f2b = params["fc2_b"].reshape(1, O2)

    kernel = functools.partial(
        rnn_kernel, num_layers=num_layers, seq_len=L, batch=Bp, hidden=H
    )

    logits_flat = pl.pallas_call(
        kernel,
        out_shape=jax.ShapeDtypeStruct((Bp, O2), jnp.float32),
        grid_spec=pltpu.PrefetchScalarGridSpec(
            num_scalar_prefetch=0,
            grid=(1,),
            in_specs=[
                pl.BlockSpec((L * Bp, D_in), lambda i: (0, 0)),      # x (time-major flat)
                pl.BlockSpec((D_in, H), lambda i: (0, 0)),           # wih0
                pl.BlockSpec((nwr, H, H), lambda i: (0, 0, 0)),      # wih layers > 0
                pl.BlockSpec((num_layers, H, H), lambda i: (0, 0, 0)),  # whh
                pl.BlockSpec((num_layers, H), lambda i: (0, 0)),     # bias
                pl.BlockSpec((H, I), lambda i: (0, 0)),              # fc1 w
                pl.BlockSpec((1, I), lambda i: (0, 0)),              # fc1 b
                pl.BlockSpec((I, O2), lambda i: (0, 0)),             # fc2 w
                pl.BlockSpec((1, O2), lambda i: (0, 0)),             # fc2 b
            ],
            out_specs=pl.BlockSpec((Bp, O2), lambda i: (0, 0)),
            scratch_shapes=[pltpu.VMEM((L * Bp, H), jnp.float32)],
        ),
        compiler_params=pltpu.CompilerParams(
            dimension_semantics=("arbitrary",),
        ),
    )(x2, wih0_t, wihr_t, whh_t, b, f1w_t, f1b, f2w_t, f2b)

    # drop batch padding, then (B, 2*O) -> (B, O, 2) (row-major, same as torch.reshape)
    return logits_flat[:B].reshape(B, output_dim, 2)


# --------------------------- pure-JAX reference --------------------------------
def rnn_model_reference(x, params, *, hidden_dim, output_dim, num_layers):
    B, L, D_in = x.shape
    hp = jax.lax.Precision.HIGHEST
    seq = x  # (B, L, D)
    for l in range(num_layers):
        w_ih = params["w_ih"][l]
        w_hh = params["w_hh"][l]
        bias = params["b_ih"][l] + params["b_hh"][l]

        def step(h, x_t):
            h_new = jnp.tanh(
                jnp.dot(x_t, w_ih.T, precision=hp)
                + jnp.dot(h, w_hh.T, precision=hp)
                + bias
            )
            return h_new, h_new

        h0 = jnp.zeros((B, hidden_dim), jnp.float32)
        _, outs = jax.lax.scan(step, h0, jnp.swapaxes(seq, 0, 1))  # (L, B, H)
        seq = jnp.swapaxes(outs, 0, 1)                             # (B, L, H)
    y1 = jnp.dot(seq, params["fc1_w"].T, precision=hp) + params["fc1_b"]
    y2 = jnp.dot(y1, params["fc2_w"].T, precision=hp) + params["fc2_b"]
    logits = y2[:, -1, :]
    return logits.reshape(B, output_dim, 2)


# ------------------------------- main ------------------------------------------
if __name__ == "__main__":
    # small shapes consistent with the module
    B, L = 2, 8
    input_dim, hidden_dim, output_dim, num_layers = 4, 32, 3, 2
    inter_dim = hidden_dim // 2

    key = jax.random.PRNGKey(0)
    keys = jax.random.split(key, 16)
    k = iter(keys)

    scale = 1.0 / np.sqrt(hidden_dim)

    def unif(kk, shape):
        return jax.random.uniform(kk, shape, jnp.float32, -scale, scale)

    params = {
        "w_ih": [
            unif(next(k), (hidden_dim, input_dim if l == 0 else hidden_dim))
            for l in range(num_layers)
        ],
        "w_hh": [unif(next(k), (hidden_dim, hidden_dim)) for l in range(num_layers)],
        "b_ih": [unif(next(k), (hidden_dim,)) for l in range(num_layers)],
        "b_hh": [unif(next(k), (hidden_dim,)) for l in range(num_layers)],
        "fc1_w": unif(next(k), (inter_dim, hidden_dim)),
        "fc1_b": unif(next(k), (inter_dim,)),
        "fc2_w": unif(next(k), (2 * output_dim, inter_dim)),
        "fc2_b": unif(next(k), (2 * output_dim,)),
    }

    x = jax.random.normal(next(k), (B, L, input_dim), jnp.float32)

    logits = rnn_model_forward(
        x, params, hidden_dim=hidden_dim, output_dim=output_dim, num_layers=num_layers
    )
    logits = jax.block_until_ready(logits)

    ref = rnn_model_reference(
        x, params, hidden_dim=hidden_dim, output_dim=output_dim, num_layers=num_layers
    )
    ref = jax.block_until_ready(ref)

    assert logits.shape == (B, output_dim, 2), logits.shape
    np.testing.assert_allclose(np.asarray(logits), np.asarray(ref), rtol=1e-3, atol=1e-3)

    print("KERNEL_OK")
</pallas_src>

<mosaic_0001>
module attributes {stable_mosaic.version = 11 : i64} {
  func.func @rnn_kernel(%arg0: i32, %arg1: memref<64x4xf32, #tpu.memory_space<vmem>>, %arg2: memref<4x32xf32, #tpu.memory_space<vmem>>, %arg3: memref<1x32x32xf32, #tpu.memory_space<vmem>>, %arg4: memref<2x32x32xf32, #tpu.memory_space<vmem>>, %arg5: memref<2x32xf32, #tpu.memory_space<vmem>>, %arg6: memref<32x16xf32, #tpu.memory_space<vmem>>, %arg7: memref<1x16xf32, #tpu.memory_space<vmem>>, %arg8: memref<16x6xf32, #tpu.memory_space<vmem>>, %arg9: memref<1x6xf32, #tpu.memory_space<vmem>>, %arg10: memref<8x6xf32, #tpu.memory_space<vmem>>, %arg11: memref<64x32xf32, #tpu.memory_space<vmem>>) attributes {dimension_semantics = [#tpu.dimension_semantics<arbitrary>], iteration_bounds = array<i64: 1>, scalar_prefetch = 0 : i64, scratch_operands = 1 : i64, tpu.core_type = #tpu.core_type<tc>, window_params = [{pipeline_mode = #tpu.pipeline_mode<synchronous>, transform_indices = @transform_0, window_bounds = array<i64: 64, 4>}, {pipeline_mode = #tpu.pipeline_mode<synchronous>, transform_indices = @transform_1, window_bounds = array<i64: 4, 32>}, {pipeline_mode = #tpu.pipeline_mode<synchronous>, transform_indices = @transform_2, window_bounds = array<i64: 1, 32, 32>}, {pipeline_mode = #tpu.pipeline_mode<synchronous>, transform_indices = @transform_3, window_bounds = array<i64: 2, 32, 32>}, {pipeline_mode = #tpu.pipeline_mode<synchronous>, transform_indices = @transform_4, window_bounds = array<i64: 2, 32>}, {pipeline_mode = #tpu.pipeline_mode<synchronous>, transform_indices = @transform_5, window_bounds = array<i64: 32, 16>}, {pipeline_mode = #tpu.pipeline_mode<synchronous>, transform_indices = @transform_6, window_bounds = array<i64: 1, 16>}, {pipeline_mode = #tpu.pipeline_mode<synchronous>, transform_indices = @transform_7, window_bounds = array<i64: 16, 6>}, {pipeline_mode = #tpu.pipeline_mode<synchronous>, transform_indices = @transform_8, window_bounds = array<i64: 1, 6>}, {pipeline_mode = #tpu.pipeline_mode<synchronous>, transform_indices = @transform_9, window_bounds = array<i64: 8, 6>}]} {
    %c0 = arith.constant 0 : index
    %c0_0 = arith.constant 0 : index
    %0 = vector.load %arg1[%c0, %c0_0] : memref<64x4xf32, #tpu.memory_space<vmem>>, vector<64x4xf32>
    %c0_1 = arith.constant 0 : index
    %c0_2 = arith.constant 0 : index
    %1 = vector.load %arg2[%c0_1, %c0_2] : memref<4x32xf32, #tpu.memory_space<vmem>>, vector<4x32xf32>
    %cst = arith.constant dense<0.000000e+00> : vector<64x32xf32>
    %2 = tpu.matmul %0, %1, %cst {dimension_numbers = #tpu.dot_dimension_numbers<[1], [0], [0], [1], [0, 0, 1, 1], [], []>} : vector<64x4xf32>, vector<4x32xf32>, vector<64x32xf32> -> vector<64x32xf32>
    %c0_3 = arith.constant 0 : index
    %c0_4 = arith.constant 0 : index
    %3 = vector.load %arg5[%c0_3, %c0_4] : memref<2x32xf32, #tpu.memory_space<vmem>>, vector<1x32xf32>
    %4 = vector.broadcast %3 : vector<1x32xf32> to vector<64x32xf32>
    %5 = arith.addf %2, %4 : vector<64x32xf32>
    %c0_5 = arith.constant 0 : index
    %c0_6 = arith.constant 0 : index
    %6 = vector.load %arg11[%c0_5, %c0_6] : memref<64x32xf32, #tpu.memory_space<vmem>>, vector<64x32xf32>
    tpu.vector_store %arg11[%c0_5, %c0_6], %5 {strides = array<i32>} : memref<64x32xf32, #tpu.memory_space<vmem>>, vector<64x32xf32>,
    %cst_7 = arith.constant 0.000000e+00 : f32
    %7 = vector.broadcast %cst_7 : f32 to vector<8x32xf32>
    %c0_8 = arith.constant 0 : index
    %c0_9 = arith.constant 0 : index
    %c0_10 = arith.constant 0 : index
    %8 = vector.load %arg4[%c0_8, %c0_9, %c0_10] : memref<2x32x32xf32, #tpu.memory_space<vmem>>, vector<1x32x32xf32>
    %9 = vector.shape_cast %8 : vector<1x32x32xf32> to vector<32x32xf32>
    %c0_i32 = arith.constant 0 : i32
    %c8_i32 = arith.constant 8 : i32
    %10 = arith.muli %c0_i32, %c8_i32 : i32
    %11 = arith.index_cast %10 : i32 to index
    %c0_11 = arith.constant 0 : index
    %12 = vector.load %arg11[%11, %c0_11] : memref<64x32xf32, #tpu.memory_space<vmem>>, vector<8x32xf32>
    %cst_12 = arith.constant dense<0.000000e+00> : vector<8x32xf32>
    %13 = tpu.matmul %7, %9, %cst_12 {dimension_numbers = #tpu.dot_dimension_numbers<[1], [0], [0], [1], [0, 0, 1, 1], [], []>} : vector<8x32xf32>, vector<32x32xf32>, vector<8x32xf32> -> vector<8x32xf32>
    %14 = arith.addf %12, %13 : vector<8x32xf32>
    %15 = math.tanh %14 : vector<8x32xf32>
    %16 = arith.index_cast %10 : i32 to index
    %c0_13 = arith.constant 0 : index
    %17 = vector.load %arg11[%16, %c0_13] : memref<64x32xf32, #tpu.memory_space<vmem>>, vector<8x32xf32>
    tpu.vector_store %arg11[%16, %c0_13], %15 {strides = array<i32>} : memref<64x32xf32, #tpu.memory_space<vmem>>, vector<8x32xf32>,
    %c1_i32 = arith.constant 1 : i32
    %c8_i32_14 = arith.constant 8 : i32
    %18 = arith.muli %c1_i32, %c8_i32_14 : i32
    %19 = arith.index_cast %18 : i32 to index
    %c0_15 = arith.constant 0 : index
    %20 = vector.load %arg11[%19, %c0_15] : memref<64x32xf32, #tpu.memory_space<vmem>>, vector<8x32xf32>
    %cst_16 = arith.constant dense<0.000000e+00> : vector<8x32xf32>
    %21 = tpu.matmul %15, %9, %cst_16 {dimension_numbers = #tpu.dot_dimension_numbers<[1], [0], [0], [1], [0, 0, 1, 1], [], []>} : vector<8x32xf32>, vector<32x32xf32>, vector<8x32xf32> -> vector<8x32xf32>
    %22 = arith.addf %20, %21 : vector<8x32xf32>
    %23 = math.tanh %22 : vector<8x32xf32>
    %24 = arith.index_cast %18 : i32 to index
    %c0_17 = arith.constant 0 : index
    %25 = vector.load %arg11[%24, %c0_17] : memref<64x32xf32, #tpu.memory_space<vmem>>, vector<8x32xf32>
    tpu.vector_store %arg11[%24, %c0_17], %23 {strides = array<i32>} : memref<64x32xf32, #tpu.memory_space<vmem>>, vector<8x32xf32>,
    %c2_i32 = arith.constant 2 : i32
    %c8_i32_18 = arith.constant 8 : i32
    %26 = arith.muli %c2_i32, %c8_i32_18 : i32
    %27 = arith.index_cast %26 : i32 to index
    %c0_19 = arith.constant 0 : index
    %28 = vector.load %arg11[%27, %c0_19] : memref<64x32xf32, #tpu.memory_space<vmem>>, vector<8x32xf32>
    %cst_20 = arith.constant dense<0.000000e+00> : vector<8x32xf32>
    %29 = tpu.matmul %23, %9, %cst_20 {dimension_numbers = #tpu.dot_dimension_numbers<[1], [0], [0], [1], [0, 0, 1, 1], [], []>} : vector<8x32xf32>, vector<32x32xf32>, vector<8x32xf32> -> vector<8x32xf32>
    %30 = arith.addf %28, %29 : vector<8x32xf32>
    %31 = math.tanh %30 : vector<8x32xf32>
    %32 = arith.index_cast %26 : i32 to index
    %c0_21 = arith.constant 0 : index
    %33 = vector.load %arg11[%32, %c0_21] : memref<64x32xf32, #tpu.memory_space<vmem>>, vector<8x32xf32>
    tpu.vector_store %arg11[%32, %c0_21], %31 {strides = array<i32>} : memref<64x32xf32, #tpu.memory_space<vmem>>, vector<8x32xf32>,
    %c3_i32 = arith.constant 3 : i32
    %c8_i32_22 = arith.constant 8 : i32
    %34 = arith.muli %c3_i32, %c8_i32_22 : i32
    %35 = arith.index_cast %34 : i32 to index
    %c0_23 = arith.constant 0 : index
    %36 = vector.load %arg11[%35, %c0_23] : memref<64x32xf32, #tpu.memory_space<vmem>>, vector<8x32xf32>
    %cst_24 = arith.constant dense<0.000000e+00> : vector<8x32xf32>
    %37 = tpu.matmul %31, %9, %cst_24 {dimension_numbers = #tpu.dot_dimension_numbers<[1], [0], [0], [1], [0, 0, 1, 1], [], []>} : vector<8x32xf32>, vector<32x32xf32>, vector<8x32xf32> -> vector<8x32xf32>
    %38 = arith.addf %36, %37 : vector<8x32xf32>
    %39 = math.tanh %38 : vector<8x32xf32>
    %40 = arith.index_cast %34 : i32 to index
    %c0_25 = arith.constant 0 : index
    %41 = vector.load %arg11[%40, %c0_25] : memref<64x32xf32, #tpu.memory_space<vmem>>, vector<8x32xf32>
    tpu.vector_store %arg11[%40, %c0_25], %39 {strides = array<i32>} : memref<64x32xf32, #tpu.memory_space<vmem>>, vector<8x32xf32>,
    %c4_i32 = arith.constant 4 : i32
    %c8_i32_26 = arith.constant 8 : i32
    %42 = arith.muli %c4_i32, %c8_i32_26 : i32
    %43 = arith.index_cast %42 : i32 to index
    %c0_27 = arith.constant 0 : index
    %44 = vector.load %arg11[%43, %c0_27] : memref<64x32xf32, #tpu.memory_space<vmem>>, vector<8x32xf32>
    %cst_28 = arith.constant dense<0.000000e+00> : vector<8x32xf32>
    %45 = tpu.matmul %39, %9, %cst_28 {dimension_numbers = #tpu.dot_dimension_numbers<[1], [0], [0], [1], [0, 0, 1, 1], [], []>} : vector<8x32xf32>, vector<32x32xf32>, vector<8x32xf32> -> vector<8x32xf32>
    %46 = arith.addf %44, %45 : vector<8x32xf32>
    %47 = math.tanh %46 : vector<8x32xf32>
    %48 = arith.index_cast %42 : i32 to index
    %c0_29 = arith.constant 0 : index
    %49 = vector.load %arg11[%48, %c0_29] : memref<64x32xf32, #tpu.memory_space<vmem>>, vector<8x32xf32>
    tpu.vector_store %arg11[%48, %c0_29], %47 {strides = array<i32>} : memref<64x32xf32, #tpu.memory_space<vmem>>, vector<8x32xf32>,
    %c5_i32 = arith.constant 5 : i32
    %c8_i32_30 = arith.constant 8 : i32
    %50 = arith.muli %c5_i32, %c8_i32_30 : i32
    %51 = arith.index_cast %50 : i32 to index
    %c0_31 = arith.constant 0 : index
    %52 = vector.load %arg11[%51, %c0_31] : memref<64x32xf32, #tpu.memory_space<vmem>>, vector<8x32xf32>
    %cst_32 = arith.constant dense<0.000000e+00> : vector<8x32xf32>
    %53 = tpu.matmul %47, %9, %cst_32 {dimension_numbers = #tpu.dot_dimension_numbers<[1], [0], [0], [1], [0, 0, 1, 1], [], []>} : vector<8x32xf32>, vector<32x32xf32>, vector<8x32xf32> -> vector<8x32xf32>
    %54 = arith.addf %52, %53 : vector<8x32xf32>
    %55 = math.tanh %54 : vector<8x32xf32>
    %56 = arith.index_cast %50 : i32 to index
    %c0_33 = arith.constant 0 : index
    %57 = vector.load %arg11[%56, %c0_33] : memref<64x32xf32, #tpu.memory_space<vmem>>, vector<8x32xf32>
    tpu.vector_store %arg11[%56, %c0_33], %55 {strides = array<i32>} : memref<64x32xf32, #tpu.memory_space<vmem>>, vector<8x32xf32>,
    %c6_i32 = arith.constant 6 : i32
    %c8_i32_34 = arith.constant 8 : i32
    %58 = arith.muli %c6_i32, %c8_i32_34 : i32
    %59 = arith.index_cast %58 : i32 to index
    %c0_35 = arith.constant 0 : index
    %60 = vector.load %arg11[%59, %c0_35] : memref<64x32xf32, #tpu.memory_space<vmem>>, vector<8x32xf32>
    %cst_36 = arith.constant dense<0.000000e+00> : vector<8x32xf32>
    %61 = tpu.matmul %55, %9, %cst_36 {dimension_numbers = #tpu.dot_dimension_numbers<[1], [0], [0], [1], [0, 0, 1, 1], [], []>} : vector<8x32xf32>, vector<32x32xf32>, vector<8x32xf32> -> vector<8x32xf32>
    %62 = arith.addf %60, %61 : vector<8x32xf32>
    %63 = math.tanh %62 : vector<8x32xf32>
    %64 = arith.index_cast %58 : i32 to index
    %c0_37 = arith.constant 0 : index
    %65 = vector.load %arg11[%64, %c0_37] : memref<64x32xf32, #tpu.memory_space<vmem>>, vector<8x32xf32>
    tpu.vector_store %arg11[%64, %c0_37], %63 {strides = array<i32>} : memref<64x32xf32, #tpu.memory_space<vmem>>, vector<8x32xf32>,
    %c7_i32 = arith.constant 7 : i32
    %c8_i32_38 = arith.constant 8 : i32
    %66 = arith.muli %c7_i32, %c8_i32_38 : i32
    %67 = arith.index_cast %66 : i32 to index
    %c0_39 = arith.constant 0 : index
    %68 = vector.load %arg11[%67, %c0_39] : memref<64x32xf32, #tpu.memory_space<vmem>>, vector<8x32xf32>
    %cst_40 = arith.constant dense<0.000000e+00> : vector<8x32xf32>
    %69 = tpu.matmul %63, %9, %cst_40 {dimension_numbers = #tpu.dot_dimension_numbers<[1], [0], [0], [1], [0, 0, 1, 1], [], []>} : vector<8x32xf32>, vector<32x32xf32>, vector<8x32xf32> -> vector<8x32xf32>
    %70 = arith.addf %68, %69 : vector<8x32xf32>
    %71 = math.tanh %70 : vector<8x32xf32>
    %72 = arith.index_cast %66 : i32 to index
    %c0_41 = arith.constant 0 : index
    %73 = vector.load %arg11[%72, %c0_41] : memref<64x32xf32, #tpu.memory_space<vmem>>, vector<8x32xf32>
    tpu.vector_store %arg11[%72, %c0_41], %71 {strides = array<i32>} : memref<64x32xf32, #tpu.memory_space<vmem>>, vector<8x32xf32>,
    %c8_i32_42 = arith.constant 8 : i32
    %c0_43 = arith.constant 0 : index
    %c0_44 = arith.constant 0 : index
    %74 = vector.load %arg11[%c0_43, %c0_44] : memref<64x32xf32, #tpu.memory_space<vmem>>, vector<64x32xf32>
    %c0_45 = arith.constant 0 : index
    %c0_46 = arith.constant 0 : index
    %c0_47 = arith.constant 0 : index
    %75 = vector.load %arg3[%c0_45, %c0_46, %c0_47] : memref<1x32x32xf32, #tpu.memory_space<vmem>>, vector<1x32x32xf32>
    %76 = vector.shape_cast %75 : vector<1x32x32xf32> to vector<32x32xf32>
    %cst_48 = arith.constant dense<0.000000e+00> : vector<64x32xf32>
    %77 = tpu.matmul %74, %76, %cst_48 {dimension_numbers = #tpu.dot_dimension_numbers<[1], [0], [0], [1], [0, 0, 1, 1], [], []>} : vector<64x32xf32>, vector<32x32xf32>, vector<64x32xf32> -> vector<64x32xf32>
    %c1 = arith.constant 1 : index
    %c0_49 = arith.constant 0 : index
    %78 = vector.load %arg5[%c1, %c0_49] : memref<2x32xf32, #tpu.memory_space<vmem>>, vector<1x32xf32>
    %79 = vector.broadcast %78 : vector<1x32xf32> to vector<64x32xf32>
    %80 = arith.addf %77, %79 : vector<64x32xf32>
    %c0_50 = arith.constant 0 : index
    %c0_51 = arith.constant 0 : index
    %81 = vector.load %arg11[%c0_50, %c0_51] : memref<64x32xf32, #tpu.memory_space<vmem>>, vector<64x32xf32>
    tpu.vector_store %arg11[%c0_50, %c0_51], %80 {strides = array<i32>} : memref<64x32xf32, #tpu.memory_space<vmem>>, vector<64x32xf32>,
    %c1_52 = arith.constant 1 : index
    %c0_53 = arith.constant 0 : index
    %c0_54 = arith.constant 0 : index
    %82 = vector.load %arg4[%c1_52, %c0_53, %c0_54] : memref<2x32x32xf32, #tpu.memory_space<vmem>>, vector<1x32x32xf32>
    %83 = vector.shape_cast %82 : vector<1x32x32xf32> to vector<32x32xf32>
    %c0_i32_55 = arith.constant 0 : i32
    %c8_i32_56 = arith.constant 8 : i32
    %84 = arith.muli %c0_i32_55, %c8_i32_56 : i32
    %85 = arith.index_cast %84 : i32 to index
    %c0_57 = arith.constant 0 : index
    %86 = vector.load %arg11[%85, %c0_57] : memref<64x32xf32, #tpu.memory_space<vmem>>, vector<8x32xf32>
    %cst_58 = arith.constant dense<0.000000e+00> : vector<8x32xf32>
    %87 = tpu.matmul %7, %83, %cst_58 {dimension_numbers = #tpu.dot_dimension_numbers<[1], [0], [0], [1], [0, 0, 1, 1], [], []>} : vector<8x32xf32>, vector<32x32xf32>, vector<8x32xf32> -> vector<8x32xf32>
    %88 = arith.addf %86, %87 : vector<8x32xf32>
    %89 = math.tanh %88 : vector<8x32xf32>
    %90 = arith.index_cast %84 : i32 to index
    %c0_59 = arith.constant 0 : index
    %91 = vector.load %arg11[%90, %c0_59] : memref<64x32xf32, #tpu.memory_space<vmem>>, vector<8x32xf32>
    tpu.vector_store %arg11[%90, %c0_59], %89 {strides = array<i32>} : memref<64x32xf32, #tpu.memory_space<vmem>>, vector<8x32xf32>,
    %c1_i32_60 = arith.constant 1 : i32
    %c8_i32_61 = arith.constant 8 : i32
    %92 = arith.muli %c1_i32_60, %c8_i32_61 : i32
    %93 = arith.index_cast %92 : i32 to index
    %c0_62 = arith.constant 0 : index
    %94 = vector.load %arg11[%93, %c0_62] : memref<64x32xf32, #tpu.memory_space<vmem>>, vector<8x32xf32>
    %cst_63 = arith.constant dense<0.000000e+00> : vector<8x32xf32>
    %95 = tpu.matmul %89, %83, %cst_63 {dimension_numbers = #tpu.dot_dimension_numbers<[1], [0], [0], [1], [0, 0, 1, 1], [], []>} : vector<8x32xf32>, vector<32x32xf32>, vector<8x32xf32> -> vector<8x32xf32>
    %96 = arith.addf %94, %95 : vector<8x32xf32>
    %97 = math.tanh %96 : vector<8x32xf32>
    %98 = arith.index_cast %92 : i32 to index
    %c0_64 = arith.constant 0 : index
    %99 = vector.load %arg11[%98, %c0_64] : memref<64x32xf32, #tpu.memory_space<vmem>>, vector<8x32xf32>
    tpu.vector_store %arg11[%98, %c0_64], %97 {strides = array<i32>} : memref<64x32xf32, #tpu.memory_space<vmem>>, vector<8x32xf32>,
    %c2_i32_65 = arith.constant 2 : i32
    %c8_i32_66 = arith.constant 8 : i32
    %100 = arith.muli %c2_i32_65, %c8_i32_66 : i32
    %101 = arith.index_cast %100 : i32 to index
    %c0_67 = arith.constant 0 : index
    %102 = vector.load %arg11[%101, %c0_67] : memref<64x32xf32, #tpu.memory_space<vmem>>, vector<8x32xf32>
    %cst_68 = arith.constant dense<0.000000e+00> : vector<8x32xf32>
    %103 = tpu.matmul %97, %83, %cst_68 {dimension_numbers = #tpu.dot_dimension_numbers<[1], [0], [0], [1], [0, 0, 1, 1], [], []>} : vector<8x32xf32>, vector<32x32xf32>, vector<8x32xf32> -> vector<8x32xf32>
    %104 = arith.addf %102, %103 : vector<8x32xf32>
    %105 = math.tanh %104 : vector<8x32xf32>
    %106 = arith.index_cast %100 : i32 to index
    %c0_69 = arith.constant 0 : index
    %107 = vector.load %arg11[%106, %c0_69] : memref<64x32xf32, #tpu.memory_space<vmem>>, vector<8x32xf32>
    tpu.vector_store %arg11[%106, %c0_69], %105 {strides = array<i32>} : memref<64x32xf32, #tpu.memory_space<vmem>>, vector<8x32xf32>,
    %c3_i32_70 = arith.constant 3 : i32
    %c8_i32_71 = arith.constant 8 : i32
    %108 = arith.muli %c3_i32_70, %c8_i32_71 : i32
    %109 = arith.index_cast %108 : i32 to index
    %c0_72 = arith.constant 0 : index
    %110 = vector.load %arg11[%109, %c0_72] : memref<64x32xf32, #tpu.memory_space<vmem>>, vector<8x32xf32>
    %cst_73 = arith.constant dense<0.000000e+00> : vector<8x32xf32>
    %111 = tpu.matmul %105, %83, %cst_73 {dimension_numbers = #tpu.dot_dimension_numbers<[1], [0], [0], [1], [0, 0, 1, 1], [], []>} : vector<8x32xf32>, vector<32x32xf32>, vector<8x32xf32> -> vector<8x32xf32>
    %112 = arith.addf %110, %111 : vector<8x32xf32>
    %113 = math.tanh %112 : vector<8x32xf32>
    %114 = arith.index_cast %108 : i32 to index
    %c0_74 = arith.constant 0 : index
    %115 = vector.load %arg11[%114, %c0_74] : memref<64x32xf32, #tpu.memory_space<vmem>>, vector<8x32xf32>
    tpu.vector_store %arg11[%114, %c0_74], %113 {strides = array<i32>} : memref<64x32xf32, #tpu.memory_space<vmem>>, vector<8x32xf32>,
    %c4_i32_75 = arith.constant 4 : i32
    %c8_i32_76 = arith.constant 8 : i32
    %116 = arith.muli %c4_i32_75, %c8_i32_76 : i32
    %117 = arith.index_cast %116 : i32 to index
    %c0_77 = arith.constant 0 : index
    %118 = vector.load %arg11[%117, %c0_77] : memref<64x32xf32, #tpu.memory_space<vmem>>, vector<8x32xf32>
    %cst_78 = arith.constant dense<0.000000e+00> : vector<8x32xf32>
    %119 = tpu.matmul %113, %83, %cst_78 {dimension_numbers = #tpu.dot_dimension_numbers<[1], [0], [0], [1], [0, 0, 1, 1], [], []>} : vector<8x32xf32>, vector<32x32xf32>, vector<8x32xf32> -> vector<8x32xf32>
    %120 = arith.addf %118, %119 : vector<8x32xf32>
    %121 = math.tanh %120 : vector<8x32xf32>
    %122 = arith.index_cast %116 : i32 to index
    %c0_79 = arith.constant 0 : index
    %123 = vector.load %arg11[%122, %c0_79] : memref<64x32xf32, #tpu.memory_space<vmem>>, vector<8x32xf32>
    tpu.vector_store %arg11[%122, %c0_79], %121 {strides = array<i32>} : memref<64x32xf32, #tpu.memory_space<vmem>>, vector<8x32xf32>,
    %c5_i32_80 = arith.constant 5 : i32
    %c8_i32_81 = arith.constant 8 : i32
    %124 = arith.muli %c5_i32_80, %c8_i32_81 : i32
    %125 = arith.index_cast %124 : i32 to index
    %c0_82 = arith.constant 0 : index
    %126 = vector.load %arg11[%125, %c0_82] : memref<64x32xf32, #tpu.memory_space<vmem>>, vector<8x32xf32>
    %cst_83 = arith.constant dense<0.000000e+00> : vector<8x32xf32>
    %127 = tpu.matmul %121, %83, %cst_83 {dimension_numbers = #tpu.dot_dimension_numbers<[1], [0], [0], [1], [0, 0, 1, 1], [], []>} : vector<8x32xf32>, vector<32x32xf32>, vector<8x32xf32> -> vector<8x32xf32>
    %128 = arith.addf %126, %127 : vector<8x32xf32>
    %129 = math.tanh %128 : vector<8x32xf32>
    %130 = arith.index_cast %124 : i32 to index
    %c0_84 = arith.constant 0 : index
    %131 = vector.load %arg11[%130, %c0_84] : memref<64x32xf32, #tpu.memory_space<vmem>>, vector<8x32xf32>
    tpu.vector_store %arg11[%130, %c0_84], %129 {strides = array<i32>} : memref<64x32xf32, #tpu.memory_space<vmem>>, vector<8x32xf32>,
    %c6_i32_85 = arith.constant 6 : i32
    %c8_i32_86 = arith.constant 8 : i32
    %132 = arith.muli %c6_i32_85, %c8_i32_86 : i32
    %133 = arith.index_cast %132 : i32 to index
    %c0_87 = arith.constant 0 : index
    %134 = vector.load %arg11[%133, %c0_87] : memref<64x32xf32, #tpu.memory_space<vmem>>, vector<8x32xf32>
    %cst_88 = arith.constant dense<0.000000e+00> : vector<8x32xf32>
    %135 = tpu.matmul %129, %83, %cst_88 {dimension_numbers = #tpu.dot_dimension_numbers<[1], [0], [0], [1], [0, 0, 1, 1], [], []>} : vector<8x32xf32>, vector<32x32xf32>, vector<8x32xf32> -> vector<8x32xf32>
    %136 = arith.addf %134, %135 : vector<8x32xf32>
    %137 = math.tanh %136 : vector<8x32xf32>
    %138 = arith.index_cast %132 : i32 to index
    %c0_89 = arith.constant 0 : index
    %139 = vector.load %arg11[%138, %c0_89] : memref<64x32xf32, #tpu.memory_space<vmem>>, vector<8x32xf32>
    tpu.vector_store %arg11[%138, %c0_89], %137 {strides = array<i32>} : memref<64x32xf32, #tpu.memory_space<vmem>>, vector<8x32xf32>,
    %c7_i32_90 = arith.constant 7 : i32
    %c8_i32_91 = arith.constant 8 : i32
    %140 = arith.muli %c7_i32_90, %c8_i32_91 : i32
    %141 = arith.index_cast %140 : i32 to index
    %c0_92 = arith.constant 0 : index
    %142 = vector.load %arg11[%141, %c0_92] : memref<64x32xf32, #tpu.memory_space<vmem>>, vector<8x32xf32>
    %cst_93 = arith.constant dense<0.000000e+00> : vector<8x32xf32>
    %143 = tpu.matmul %137, %83, %cst_93 {dimension_numbers = #tpu.dot_dimension_numbers<[1], [0], [0], [1], [0, 0, 1, 1], [], []>} : vector<8x32xf32>, vector<32x32xf32>, vector<8x32xf32> -> vector<8x32xf32>
    %144 = arith.addf %142, %143 : vector<8x32xf32>
    %145 = math.tanh %144 : vector<8x32xf32>
    %146 = arith.index_cast %140 : i32 to index
    %c0_94 = arith.constant 0 : index
    %147 = vector.load %arg11[%146, %c0_94] : memref<64x32xf32, #tpu.memory_space<vmem>>, vector<8x32xf32>
    tpu.vector_store %arg11[%146, %c0_94], %145 {strides = array<i32>} : memref<64x32xf32, #tpu.memory_space<vmem>>, vector<8x32xf32>,
    %c8_i32_95 = arith.constant 8 : i32
    %c0_96 = arith.constant 0 : index
    %c0_97 = arith.constant 0 : index
    %148 = vector.load %arg6[%c0_96, %c0_97] : memref<32x16xf32, #tpu.memory_space<vmem>>, vector<32x16xf32>
    %cst_98 = arith.constant dense<0.000000e+00> : vector<8x16xf32>
    %149 = tpu.matmul %145, %148, %cst_98 {dimension_numbers = #tpu.dot_dimension_numbers<[1], [0], [0], [1], [0, 0, 1, 1], [], []>} : vector<8x32xf32>, vector<32x16xf32>, vector<8x16xf32> -> vector<8x16xf32>
    %c0_99 = arith.constant 0 : index
    %c0_100 = arith.constant 0 : index
    %150 = vector.load %arg7[%c0_99, %c0_100] : memref<1x16xf32, #tpu.memory_space<vmem>>, vector<1x16xf32>
    %151 = vector.broadcast %150 : vector<1x16xf32> to vector<8x16xf32>
    %152 = arith.addf %149, %151 : vector<8x16xf32>
    %c0_101 = arith.constant 0 : index
    %c0_102 = arith.constant 0 : index
    %153 = vector.load %arg8[%c0_101, %c0_102] : memref<16x6xf32, #tpu.memory_space<vmem>>, vector<16x6xf32>
    %cst_103 = arith.constant dense<0.000000e+00> : vector<8x6xf32>
    %154 = tpu.matmul %152, %153, %cst_103 {dimension_numbers = #tpu.dot_dimension_numbers<[1], [0], [0], [1], [0, 0, 1, 1], [], []>} : vector<8x16xf32>, vector<16x6xf32>, vector<8x6xf32> -> vector<8x6xf32>
    %c0_104 = arith.constant 0 : index
    %c0_105 = arith.constant 0 : index
    %155 = vector.load %arg9[%c0_104, %c0_105] : memref<1x6xf32, #tpu.memory_space<vmem>>, vector<1x6xf32>
    %156 = vector.broadcast %155 : vector<1x6xf32> to vector<8x6xf32>
    %157 = arith.addf %154, %156 : vector<8x6xf32>
    %c0_106 = arith.constant 0 : index
    %c0_107 = arith.constant 0 : index
    %158 = vector.load %arg10[%c0_106, %c0_107] : memref<8x6xf32, #tpu.memory_space<vmem>>, vector<8x6xf32>
    tpu.vector_store %arg10[%c0_106, %c0_107], %157 {strides = array<i32>} : memref<8x6xf32, #tpu.memory_space<vmem>>, vector<8x6xf32>,
    return
  }
  func.func @transform_0(%arg0: i32) -> (i32, i32) {
    %c0_i32 = arith.constant 0 : i32
    %c0_i32_0 = arith.constant 0 : i32
    %c0_i32_1 = arith.constant 0 : i32
    return %c0_i32, %c0_i32_0 : i32, i32
  }
  func.func @transform_1(%arg0: i32) -> (i32, i32) {
    %c0_i32 = arith.constant 0 : i32
    %c0_i32_0 = arith.constant 0 : i32
    %c0_i32_1 = arith.constant 0 : i32
    return %c0_i32, %c0_i32_0 : i32, i32
  }
  func.func @transform_2(%arg0: i32) -> (i32, i32, i32) {
    %c0_i32 = arith.constant 0 : i32
    %c0_i32_0 = arith.constant 0 : i32
    %c0_i32_1 = arith.constant 0 : i32
    %c0_i32_2 = arith.constant 0 : i32
    return %c0_i32, %c0_i32_0, %c0_i32_1 : i32, i32, i32
  }
  func.func @transform_3(%arg0: i32) -> (i32, i32, i32) {
    %c0_i32 = arith.constant 0 : i32
    %c0_i32_0 = arith.constant 0 : i32
    %c0_i32_1 = arith.constant 0 : i32
    %c0_i32_2 = arith.constant 0 : i32
    return %c0_i32, %c0_i32_0, %c0_i32_1 : i32, i32, i32
  }
  func.func @transform_4(%arg0: i32) -> (i32, i32) {
    %c0_i32 = arith.constant 0 : i32
    %c0_i32_0 = arith.constant 0 : i32
    %c0_i32_1 = arith.constant 0 : i32
    return %c0_i32, %c0_i32_0 : i32, i32
  }
  func.func @transform_5(%arg0: i32) -> (i32, i32) {
    %c0_i32 = arith.constant 0 : i32
    %c0_i32_0 = arith.constant 0 : i32
    %c0_i32_1 = arith.constant 0 : i32
    return %c0_i32, %c0_i32_0 : i32, i32
  }
  func.func @transform_6(%arg0: i32) -> (i32, i32) {
    %c0_i32 = arith.constant 0 : i32
    %c0_i32_0 = arith.constant 0 : i32
    %c0_i32_1 = arith.constant 0 : i32
    return %c0_i32, %c0_i32_0 : i32, i32
  }
  func.func @transform_7(%arg0: i32) -> (i32, i32) {
    %c0_i32 = arith.constant 0 : i32
    %c0_i32_0 = arith.constant 0 : i32
    %c0_i32_1 = arith.constant 0 : i32
    return %c0_i32, %c0_i32_0 : i32, i32
  }
  func.func @transform_8(%arg0: i32) -> (i32, i32) {
    %c0_i32 = arith.constant 0 : i32
    %c0_i32_0 = arith.constant 0 : i32
    %c0_i32_1 = arith.constant 0 : i32
    return %c0_i32, %c0_i32_0 : i32, i32
  }
  func.func @transform_9(%arg0: i32) -> (i32, i32) {
    %c0_i32 = arith.constant 0 : i32
    %c0_i32_0 = arith.constant 0 : i32
    %c0_i32_1 = arith.constant 0 : i32
    return %c0_i32, %c0_i32_0 : i32, i32
  }
}

</mosaic_0001>

<bundles_post_ra>
// kernel: tpu_custom_call.1
= control target key start
LH: loop header
LB: loop body
LE: loop exit
PB: predicated region body
PF: predicated region fallthrough
CT: control target
= control target key end

     0   :  { %vm72_vm0 = vcmask 1043456   ;;  %vm47_vm1 = vcmask 31744   ;;  %v2200_v4 = vmov 0.0   ;;  %s2620_s0 = inlined_call_operand.vmem [shape: f32[64,4], index: 0, kind: input, shape index: {}]   ;;  %s2621_s1 = inlined_call_operand.vmem [shape: f32[4,32], index: 1, kind: input, shape index: {}]   ;;  %s2622_s2 = inlined_call_operand.vmem [shape: f32[1,32,32], index: 2, kind: input, shape index: {}]   ;;  %s2623_s3 = inlined_call_operand.vmem [shape: f32[2,32,32], index: 3, kind: input, shape index: {}]   ;;  %s2624_s4 = inlined_call_operand.vmem [shape: f32[2,32], index: 4, kind: input, shape index: {}]   ;;  %s2625_s5 = inlined_call_operand.vmem [shape: f32[32,16], index: 5, kind: input, shape index: {}]   ;;  %s2626_s6 = inlined_call_operand.vmem [shape: f32[1,16], index: 6, kind: input, shape index: {}]   ;;  %s2627_s7 = inlined_call_operand.vmem [shape: f32[16,6], index: 7, kind: input, shape index: {}]   ;;  %s2628_s8 = inlined_call_operand.vmem [shape: f32[1,6], index: 8, kind: input, shape index: {}]   ;;  %s2629_s9 = inlined_call_operand.hbm [shape: f32[8,6], index: 9, kind: output, shape index: {}]  }
   0x1   :  { %v41_v0 = vld [vmem:[%s2621_s1] sm:$0xf]  ;;  %v34_v2 = vld [vmem:[%s2620_s0 + $0x8] sm:$0xff]  ;;  %v2266_v3 = vld [vmem:[%s2623_s3 + $0x18] sm:$0xff]  ;;  %1929 = vmatprep.subr.mxu1 %v2200_v4 }
   0x2   :  { %v33_v1 = vld [vmem:[%s2620_s0] sm:$0xff]  ;;  %1915 = vmatprep.subr.msk.mxu0 %vm72_vm0, %v41_v0  ;;  %v2272_v5 = vld [vmem:[%s2623_s3 + $0x10] sm:$0xff] }
   0x3   :  { %1917 = vmatprep.mubr.msk.f32.mxu0 %vm47_vm1, %v33_v1  ;;  %1916 = vmatpush3.msk.msra.mxu0 %vm72_vm0, %v41_v0 }
   0x4   :  { %14 = vsyncpa [#allocation4], 0  ;;  %1918 = vmatmul.mubr.msk.f32.vlgmr.msra.gmra.mxu0 %vm47_vm1, %v34_v2  ;;  %1930 = vmatpush3.msra.mxu1 %v2266_v3  ;;  %v2280_v6 = vld [vmem:[%s2623_s3 + $0x8] sm:$0xff]  ;;  %vm2201_vm2 = vmmov 0   ;;  %v2290_v7 = vld [vmem:[%s2623_s3] sm:$0xff]  ;;  %vm181_vm3 = vcmask 261120  }
   0x5   :  { %1931 = vmatprep.subr.mxu1 %v2200_v4  ;;  %1937 = vmatprep.mubr.msk.f32.mxu1 %vm2201_vm2, %v2200_v4  ;;  %v2318_v8 = vld [vmem:[%s2624_s4] ss:$0 sm:$0xff]  ;;  %v35_v18 = vld [vmem:[%s2620_s0 + $0x10] sm:$0xff]  ;;  %v36_v19 = vld [vmem:[%s2620_s0 + $0x18] sm:$0xff]  ;;  %vm1675_vm4 = vcmask 130048   ;;  %s2202_s20 = smov [#allocation3]  }
   0x6   :  { %1932 = vmatpush3.msra.mxu1 %v2272_v5  ;;  %1951 = vmatprep.subr.mxu0 %v2200_v4  ;;  %v37_v20 = vld [vmem:[%s2620_s0 + $0x20] sm:$0xff]  ;;  %v38_v21 = vld [vmem:[%s2620_s0 + $0x28] sm:$0xff]  ;;  %v39_v22 = vld [vmem:[%s2620_s0 + $0x30] sm:$0xff]  ;;  %vm1749_vm5 = vcmask 48128  }
   0x7   :  { %1933 = vmatprep.subr.mxu1 %v2200_v4  ;;  %1952 = vmatpush3.msra.mxu0 %v2266_v3  ;;  %v40_v23 = vld [vmem:[%s2620_s0 + $0x38] sm:$0xff]  ;;  %v820_v62 = vld [vmem:[%s2622_s2 + $0x10] sm:$0xff]  ;;  %v819_v0 = vld [vmem:[%s2622_s2 + $0x8] sm:$0xff] }
   0x8   :  { %1934 = vmatpush3.msra.mxu1 %v2280_v6  ;;  %1953 = vmatprep.subr.mxu0 %v2200_v4  ;;  %v821_v56 = vld [vmem:[%s2622_s2 + $0x18] sm:$0xff]  ;;  %v818_v1 = vld [vmem:[%s2622_s2] sm:$0xff]  ;;  %s1757_s2 = sshll.u32 %s2202_s20, 4  ;;  %s1758_s2 = int_to_ptr.vmem [resolvable:$true] %s1757_s2 }
   0x9   :  { %1935 = vmatprep.subr.mxu1 %v2200_v4  ;;  %1954 = vmatpush3.msra.mxu0 %v2272_v5  ;;  %p2183_p1 = scmp.lt.s32.totalorder %s1758_s2, %s1758_s2 }
   0xa   :  { %1936 = vmatpush3.msra.mxu1 %v2290_v7  ;;  %1955 = vmatprep.subr.mxu0 %v2200_v4 }
   0xb   :  { %1938 = vmatmul.mubr.f32.vlgmr.msra.gmra.mxu1 %v2200_v4  ;;  %1940 = vmatprep.subr.mxu1 %v2200_v4 }
   0xc   :  { %1941 = vmatpush3.msra.mxu1 %v2266_v3  ;;  %1948 = vmatprep.mubr.msk.f32.mxu1 %vm2201_vm2, %v2200_v4 }
   0xd   :  { %1942 = vmatprep.subr.mxu1 %v2200_v4  ;;  %1956 = vmatpush3.msra.mxu0 %v2280_v6 }
   0xe   :  { %1943 = vmatpush3.msra.mxu1 %v2272_v5  ;;  %1957 = vmatprep.subr.mxu0 %v2200_v4 }
   0xf   :  { %1944 = vmatprep.subr.mxu1 %v2200_v4  ;;  %1958 = vmatpush3.msra.mxu0 %v2290_v7 }
  0x10   :  { %1945 = vmatpush3.msra.mxu1 %v2280_v6  ;;  %1973 = vmatprep.subr.mxu0 %v2200_v4 }
  0x11   :  { %1946 = vmatprep.subr.mxu1 %v2200_v4  ;;  %1920 = vmatprep.mubr.msk.f32.mxu0 %vm47_vm1, %v35_v18 }
  0x12   :  { %1947 = vmatpush3.msra.mxu1 %v2290_v7  ;;  %1921 = vmatmul.mubr.msk.f32.gmra.mxu0 %vm47_vm1, %v36_v19 }
  0x13   :  { %1962 = vmatprep.subr.mxu1 %v2200_v4  ;;  %1923 = vmatprep.mubr.msk.f32.mxu0 %vm47_vm1, %v37_v20 }
  0x16   :  { %1924 = vmatmul.mubr.msk.f32.gmra.mxu0 %vm47_vm1, %v38_v21 }
  0x17   :  { %1926 = vmatprep.mubr.msk.f32.mxu0 %vm47_vm1, %v39_v22 }
  0x1a   :  { %1927 = vmatmul.mubr.msk.f32.gmra.mxu0 %vm47_vm1, %v40_v23 }
  0x1b   :  { %1959 = vmatprep.mubr.msk.f32.mxu0 %vm2201_vm2, %v2200_v4 }
  0xc4   :  { %v1919_v9 = vpop.f32.mrf.mxu0 }
  0xc5   :  { %v148_v10 = vadd.f32 %v1919_v9, %v2318_v8  ;;  %v2451_v9 = vld [vmem:[%s2623_s3 + $0x30] sm:$0xff] }
  0xc6   :  { %v142_v11 = vpop.f32.mrf.mxu0 }
  0xc7   :  { %183 = vst.msk [vmem:[#allocation2 + $0x8] sm:$0xff] %vm181_vm3, %v148_v10  ;;  %v143_v12 = vadd.f32 %v2318_v8, %v142_v11  ;;  %v2458_v10 = vld [vmem:[%s2623_s3 + $0x28] sm:$0xff]  ;;  %v2465_v11 = vld [vmem:[%s2623_s3 + $0x20] sm:$0xff] }
  0xc9   :  { %182 = vst.msk [vmem:[#allocation2] sm:$0xff] %vm181_vm3, %v143_v12 }
  0xcb   :  { %v264_v13 = vpop.f32.mrf.mxu1 }
  0xcd   :  { %v1939_v14 = vpop.f32.mrf.mxu1 }
  0xce   :  { %v271_v24 = vld [vmem:[#allocation2 + $0x8] sm:$0xff] }
  0xd0   :  { %v194_v15 = vld [vmem:[#allocation2] sm:$0xff] }
  0xd1   :  { %v268_v16 = vadd.f32 %v264_v13, %v194_v15 }
  0xd2   :  { %v1922_v29 = vpop.f32.mrf.mxu0 }
  0xd3   :  { %2146 = vtanh.f32 %v268_v16  ;;  %v158_v30 = vadd.f32 %v1922_v29, %v2318_v8  ;;  %v2473_v16 = vld [vmem:[%s2624_s4 + $0x1] ss:$0 sm:$0xff] }
  0xd4   :  { %v152_v31 = vpop.f32.mrf.mxu0 }
  0xd5   :  { %185 = vst.msk [vmem:[#allocation2 + $0x18] sm:$0xff] %vm181_vm3, %v158_v30  ;;  %v153_v32 = vadd.f32 %v2318_v8, %v152_v31 }
  0xd6   :  { %v1925_v33 = vpop.f32.mrf.mxu0 }
  0xd7   :  { %184 = vst.msk [vmem:[#allocation2 + $0x10] sm:$0xff] %vm181_vm3, %v153_v32  ;;  %v168_v34 = vadd.f32 %v1925_v33, %v2318_v8 }
  0xd8   :  { %v162_v35 = vpop.f32.mrf.mxu0 }
  0xd9   :  { %187 = vst.msk [vmem:[#allocation2 + $0x28] sm:$0xff] %vm181_vm3, %v168_v34  ;;  %v163_v36 = vadd.f32 %v2318_v8, %v162_v35 }
  0xda   :  { %v1928_v37 = vpop.f32.mrf.mxu0 }
  0xdb   :  { %186 = vst.msk [vmem:[#allocation2 + $0x20] sm:$0xff] %vm181_vm3, %v163_v36  ;;  %v178_v38 = vadd.f32 %v1928_v37, %v2318_v8 }
  0xdc   :  { %v172_v39 = vpop.f32.mrf.mxu0  ;;  %v425_v46 = vld [vmem:[#allocation2 + $0x18] sm:$0xff] }
  0xdd   :  { %189 = vst.msk [vmem:[#allocation2 + $0x38] sm:$0xff] %vm181_vm3, %v178_v38  ;;  %v173_v40 = vadd.f32 %v2318_v8, %v172_v39  ;;  %v2445_v8 = vld [vmem:[%s2623_s3 + $0x38] sm:$0xff] }
  0xde   :  { %v348_v41 = vld [vmem:[#allocation2 + $0x10] sm:$0xff] }
  0xdf   :  { %188 = vst.msk [vmem:[#allocation2 + $0x30] sm:$0xff] %vm181_vm3, %v173_v40 }
  0xe0   :  { %v2147_v17 = vpop.eup %2146  ;;  %v579_v57 = vld [vmem:[#allocation2 + $0x28] sm:$0xff] }
  0xe1   :  { %270 = vst.msk [vmem:[#allocation2] sm:$0xff] %vm181_vm3, %v2147_v17  ;;  %1949 = vmatmul.mubr.msk.f32.vlgmr.msra.gmra.mxu1 %vm181_vm3, %v2147_v17 }
  0xe2   :  { %1963 = vmatpush3.msra.mxu1 %v2266_v3  ;;  %1970 = vmatprep.mubr.msk.f32.mxu1 %vm2201_vm2, %v2200_v4  ;;  %v502_v51 = vld [vmem:[#allocation2 + $0x20] sm:$0xff] }
  0xe3   :  { %1964 = vmatprep.subr.mxu1 %v2200_v4 }
  0xe4   :  { %1965 = vmatpush3.msra.mxu1 %v2272_v5  ;;  %v733_v31 = vld [vmem:[#allocation2 + $0x38] sm:$0xff] }
  0xe5   :  { %1966 = vmatprep.subr.mxu1 %v2200_v4 }
  0xe6   :  { %1967 = vmatpush3.msra.mxu1 %v2280_v6  ;;  %v656_v12 = vld [vmem:[#allocation2 + $0x30] sm:$0xff] }
  0xe7   :  { %1968 = vmatprep.subr.mxu1 %v2200_v4 }
  0xe8   :  { %1969 = vmatpush3.msra.mxu1 %v2290_v7  ;;  %v810_v63 = vld [vmem:[#allocation2] sm:$0xff] }
  0xe9   :  { %1984 = vmatprep.subr.mxu1 %v2200_v4 }
 0x1a1   :  { %v341_v25 = vpop.f32.mrf.mxu1 }
 0x1a2   :  { %v345_v26 = vadd.f32 %v341_v25, %v271_v24 }
 0x1a3   :  { %v1950_v27 = vpop.f32.mrf.mxu1 }
 0x1a4   :  { %2148 = vtanh.f32 %v345_v26 }
 0x1b1   :  { %v2149_v28 = vpop.eup %2148 }
 0x1b2   :  { %347 = vst.msk [vmem:[#allocation2 + $0x8] sm:$0xff] %vm181_vm3, %v2149_v28  ;;  %1960 = vmatmul.mubr.msk.f32.vlgmr.msra.gmra.mxu0 %vm181_vm3, %v2149_v28 }
 0x1b3   :  { %1974 = vmatpush3.msra.mxu0 %v2266_v3  ;;  %1981 = vmatprep.mubr.msk.f32.mxu0 %vm2201_vm2, %v2200_v4 }
 0x1b4   :  { %1975 = vmatprep.subr.mxu0 %v2200_v4 }
 0x1b5   :  { %1976 = vmatpush3.msra.mxu0 %v2272_v5 }
 0x1b6   :  { %1977 = vmatprep.subr.mxu0 %v2200_v4 }
 0x1b7   :  { %1978 = vmatpush3.msra.mxu0 %v2280_v6 }
 0x1b8   :  { %1979 = vmatprep.subr.mxu0 %v2200_v4 }
 0x1b9   :  { %1980 = vmatpush3.msra.mxu0 %v2290_v7  ;;  %v811_v2 = vld [vmem:[#allocation2 + $0x8] sm:$0xff] }
 0x1ba   :  { %1995 = vmatprep.subr.mxu0 %v2200_v4 }
 0x272   :  { %v418_v42 = vpop.f32.mrf.mxu0 }
 0x273   :  { %v422_v43 = vadd.f32 %v418_v42, %v348_v41 }
 0x274   :  { %v1961_v44 = vpop.f32.mrf.mxu0 }
 0x275   :  { %2150 = vtanh.f32 %v422_v43 }
 0x282   :  { %v2151_v45 = vpop.eup %2150 }
 0x283   :  { %424 = vst.msk [vmem:[#allocation2 + $0x10] sm:$0xff] %vm181_vm3, %v2151_v45  ;;  %1971 = vmatmul.mubr.msk.f32.vlgmr.msra.gmra.mxu1 %vm181_vm3, %v2151_v45 }
 0x284   :  { %1985 = vmatpush3.msra.mxu1 %v2266_v3  ;;  %1992 = vmatprep.mubr.msk.f32.mxu1 %vm2201_vm2, %v2200_v4 }
 0x285   :  { %1986 = vmatprep.subr.mxu1 %v2200_v4 }
 0x286   :  { %1987 = vmatpush3.msra.mxu1 %v2272_v5 }
 0x287   :  { %1988 = vmatprep.subr.mxu1 %v2200_v4 }
 0x288   :  { %1989 = vmatpush3.msra.mxu1 %v2280_v6 }
 0x289   :  { %1990 = vmatprep.subr.mxu1 %v2200_v4 }
 0x28a   :  { %1991 = vmatpush3.msra.mxu1 %v2290_v7 }
 0x28b   :  { %2006 = vmatprep.subr.mxu1 %v2200_v4 }
 0x343   :  { %v495_v47 = vpop.f32.mrf.mxu1 }
 0x344   :  { %v499_v48 = vadd.f32 %v495_v47, %v425_v46 }
 0x345   :  { %v1972_v49 = vpop.f32.mrf.mxu1 }
 0x346   :  { %2152 = vtanh.f32 %v499_v48 }
 0x353   :  { %v2153_v50 = vpop.eup %2152 }
 0x354   :  { %501 = vst.msk [vmem:[#allocation2 + $0x18] sm:$0xff] %vm181_vm3, %v2153_v50  ;;  %1982 = vmatmul.mubr.msk.f32.vlgmr.msra.gmra.mxu0 %vm181_vm3, %v2153_v50 }
 0x355   :  { %1996 = vmatpush3.msra.mxu0 %v2266_v3  ;;  %2003 = vmatprep.mubr.msk.f32.mxu0 %vm2201_vm2, %v2200_v4 }
 0x356   :  { %1997 = vmatprep.subr.mxu0 %v2200_v4 }
 0x357   :  { %1998 = vmatpush3.msra.mxu0 %v2272_v5 }
 0x358   :  { %1999 = vmatprep.subr.mxu0 %v2200_v4 }
 0x359   :  { %2000 = vmatpush3.msra.mxu0 %v2280_v6 }
 0x35a   :  { %2001 = vmatprep.subr.mxu0 %v2200_v4 }
 0x35b   :  { %2002 = vmatpush3.msra.mxu0 %v2290_v7 }
 0x35c   :  { %2017 = vmatprep.subr.mxu0 %v821_v56 }
 0x414   :  { %v572_v52 = vpop.f32.mrf.mxu0 }
 0x415   :  { %v576_v53 = vadd.f32 %v572_v52, %v502_v51 }
 0x416   :  { %v1983_v54 = vpop.f32.mrf.mxu0 }
 0x417   :  { %2154 = vtanh.f32 %v576_v53 }
 0x424   :  { %v2155_v55 = vpop.eup %2154 }
 0x425   :  { %578 = vst.msk [vmem:[#allocation2 + $0x20] sm:$0xff] %vm181_vm3, %v2155_v55  ;;  %1993 = vmatmul.mubr.msk.f32.vlgmr.msra.gmra.mxu1 %vm181_vm3, %v2155_v55 }
 0x426   :  { %2007 = vmatpush3.msra.mxu1 %v2266_v3  ;;  %2014 = vmatprep.mubr.msk.f32.mxu1 %vm2201_vm2, %v2200_v4  ;;  %v812_v3 = vld [vmem:[#allocation2 + $0x10] sm:$0xff] }
 0x427   :  { %2008 = vmatprep.subr.mxu1 %v2200_v4 }
 0x428   :  { %2009 = vmatpush3.msra.mxu1 %v2272_v5  ;;  %v813_v5 = vld [vmem:[#allocation2 + $0x18] sm:$0xff] }
 0x429   :  { %2010 = vmatprep.subr.mxu1 %v2200_v4 }
 0x42a   :  { %2011 = vmatpush3.msra.mxu1 %v2280_v6 }
 0x42b   :  { %2012 = vmatprep.subr.mxu1 %v2200_v4 }
 0x42c   :  { %2013 = vmatpush3.msra.mxu1 %v2290_v7  ;;  %v814_v6 = vld [vmem:[#allocation2 + $0x20] sm:$0xff] }
 0x42d   :  { %2037 = vmatprep.subr.mxu1 %v2200_v4 }
 0x4e5   :  { %v649_v58 = vpop.f32.mrf.mxu1 }
 0x4e6   :  { %v653_v59 = vadd.f32 %v649_v58, %v579_v57 }
 0x4e7   :  { %v1994_v60 = vpop.f32.mrf.mxu1 }
 0x4e8   :  { %2156 = vtanh.f32 %v653_v59 }
 0x4f5   :  { %v2157_v61 = vpop.eup %2156 }
 0x4f6   :  { %655 = vst.msk [vmem:[#allocation2 + $0x28] sm:$0xff] %vm181_vm3, %v2157_v61  ;;  %2004 = vmatmul.mubr.msk.f32.vlgmr.msra.gmra.mxu0 %vm181_vm3, %v2157_v61 }
 0x4f7   :  { %2018 = vmatpush3.msra.mxu0 %v821_v56  ;;  %2025 = vmatprep.mubr.msk.f32.mxu0 %vm181_vm3, %v810_v63 }
 0x4f8   :  { %2019 = vmatprep.subr.mxu0 %v820_v62 }
 0x4f9   :  { %2020 = vmatpush3.msra.mxu0 %v820_v62 }
 0x4fa   :  { %2021 = vmatprep.subr.mxu0 %v819_v0 }
 0x4fb   :  { %2022 = vmatpush3.msra.mxu0 %v819_v0 }
 0x4fc   :  { %2023 = vmatprep.subr.mxu0 %v818_v1 }
 0x4fd   :  { %2024 = vmatpush3.msra.mxu0 %v818_v1  ;;  %v815_v7 = vld [vmem:[#allocation2 + $0x28] sm:$0xff] }
 0x4fe   :  { %2026 = vmatmul.mubr.msk.f32.vlgmr.msra.gmra.mxu0 %vm181_vm3, %v811_v2  ;;  %2059 = vmatprep.subr.mxu0 %v2200_v4 }
 0x4ff   :  { %2028 = vmatprep.mubr.msk.f32.mxu0 %vm181_vm3, %v812_v3  ;;  %2060 = vmatpush3.msra.mxu0 %v2445_v8 }
 0x500   :  { %2061 = vmatprep.subr.mxu0 %v2200_v4 }
 0x501   :  { %2062 = vmatpush3.msra.mxu0 %v2451_v9 }
 0x502   :  { %2029 = vmatmul.mubr.msk.f32.gmra.mxu0 %vm181_vm3, %v813_v5  ;;  %2063 = vmatprep.subr.mxu0 %v2200_v4 }
 0x503   :  { %2031 = vmatprep.mubr.msk.f32.mxu0 %vm181_vm3, %v814_v6  ;;  %2064 = vmatpush3.msra.mxu0 %v2458_v10 }
 0x504   :  { %2065 = vmatprep.subr.mxu0 %v2200_v4 }
 0x505   :  { %2066 = vmatpush3.msra.mxu0 %v2465_v11 }
 0x506   :  { %2032 = vmatmul.mubr.msk.f32.gmra.mxu0 %vm181_vm3, %v815_v7  ;;  %2081 = vmatprep.subr.mxu0 %v2200_v4 }
 0x5b6   :  { %v726_v13 = vpop.f32.mrf.mxu0 }
 0x5b7   :  { %v730_v14 = vadd.f32 %v726_v13, %v656_v12  ;;  %v1585_v13 = vld [vmem:[%s2625_s5 + $0x18] sm:$0xff] }
 0x5b8   :  { %v2005_v15 = vpop.f32.mrf.mxu0 }
 0x5b9   :  { %2158 = vtanh.f32 %v730_v14  ;;  %v1584_v14 = vld [vmem:[%s2625_s5 + $0x10] sm:$0xff]  ;;  %v1583_v15 = vld [vmem:[%s2625_s5 + $0x8] sm:$0xff] }
 0x5be   :  { %v2027_v17 = vpop.f32.mrf.mxu0 }
 0x5bf   :  { %v923_v18 = vadd.f32 %v2027_v17, %v2473_v16  ;;  %v1667_v17 = vld [vmem:[%s2627_s7 + $0x8] sm:$0xff] }
 0x5c0   :  { %v917_v19 = vpop.f32.mrf.mxu0 }
 0x5c1   :  { %957 = vst.msk [vmem:[#allocation2 + $0x8] sm:$0xff] %vm181_vm3, %v923_v18  ;;  %v918_v20 = vadd.f32 %v2473_v16, %v917_v19 }
 0x5c2   :  { %v2030_v21 = vpop.f32.mrf.mxu0 }
 0x5c3   :  { %956 = vst.msk [vmem:[#allocation2] sm:$0xff] %vm181_vm3, %v918_v20  ;;  %v933_v22 = vadd.f32 %v2030_v21, %v2473_v16 }
 0x5c4   :  { %v927_v23 = vpop.f32.mrf.mxu0 }
 0x5c5   :  { %959 = vst.msk [vmem:[#allocation2 + $0x18] sm:$0xff] %vm181_vm3, %v933_v22  ;;  %v928_v24 = vadd.f32 %v2473_v16, %v927_v23  ;;  %v1666_v23 = vld [vmem:[%s2627_s7] sm:$0xff]  ;;  %s2178_s7 = scalar_lea.vmem %s1758_s2, 128 }
 0x5c6   :  { %v2159_v25 = vpop.eup %2158  ;;  %v2033_v26 = vpop.f32.mrf.mxu0  ;;  %p2179_p0 = scmp.ne.s32.totalorder %s1758_s2, %s2178_s7  ;;  %p2184_p2 = scmp.lt.s32.totalorder %s2178_s7, %s2178_s7 }
 0x5c7   :  { %732 = vst.msk [vmem:[#allocation2 + $0x30] sm:$0xff] %vm181_vm3, %v2159_v25  ;;  %958 = vst.msk [vmem:[#allocation2 + $0x10] sm:$0xff] %vm181_vm3, %v928_v24  ;;  %v943_v27 = vadd.f32 %v2033_v26, %v2473_v16  ;;  %2015 = vmatmul.mubr.msk.f32.vlgmr.msra.gmra.mxu1 %vm181_vm3, %v2159_v25  ;;  %v1802_v24 = vld [vmem:[%s2626_s6] ss:$0 sm:$0xff] }
 0x5c8   :  { %v937_v28 = vpop.f32.mrf.mxu0  ;;  %2038 = vmatpush3.msra.mxu1 %v2445_v8  ;;  %2045 = vmatprep.mubr.msk.f32.mxu1 %vm2201_vm2, %v2200_v4  ;;  %v1043_v42 = vld [vmem:[#allocation2 + $0x8] sm:$0xff]  ;;  %p2185_p3 = por %p2184_p2, %p2183_p1 }
 0x5c9   :  { %961 = vst.msk [vmem:[#allocation2 + $0x28] sm:$0xff] %vm181_vm3, %v943_v27  ;;  %v938_v29 = vadd.f32 %v2473_v16, %v937_v28  ;;  %2039 = vmatprep.subr.mxu1 %v2200_v4  ;;  %v1804_v27 = vld [vmem:[%s2628_s8] ss:$0 sm:$0xff] }
 0x5ca   :  { %2040 = vmatpush3.msra.mxu1 %v2451_v9  ;;  %v969_v35 = vld [vmem:[#allocation2] sm:$0xff]  ;;  %p2186_p4 = pnand %p2185_p3, %p2179_p0 }
 0x5cb   :  { %960 = vst.msk [vmem:[#allocation2 + $0x20] sm:$0xff] %vm181_vm3, %v938_v29  ;;  %2041 = vmatprep.subr.mxu1 %v2200_v4 }
 0x5cc   :  { %2042 = vmatpush3.msra.mxu1 %v2458_v10  ;;  %v1197_v56 = vld [vmem:[#allocation2 + $0x18] sm:$0xff] }
 0x5cd   :  { %2043 = vmatprep.subr.mxu1 %v2200_v4 }
 0x5ce   :  { %2044 = vmatpush3.msra.mxu1 %v2465_v11  ;;  %v816_v30 = vld [vmem:[#allocation2 + $0x30] sm:$0xff] }
 0x5cf   :  { %2046 = vmatmul.mubr.f32.vlgmr.msra.gmra.mxu1 %v2200_v4  ;;  %2034 = vmatprep.mubr.msk.f32.mxu0 %vm181_vm3, %v816_v30  ;;  %v1120_v51 = vld [vmem:[#allocation2 + $0x10] sm:$0xff] }
 0x5d0   :  { %2048 = vmatprep.subr.mxu1 %v2200_v4  ;;  %2056 = vmatprep.mubr.msk.f32.mxu1 %vm2201_vm2, %v2200_v4  ;;  %v1351_v2 = vld [vmem:[#allocation2 + $0x28] sm:$0xff] }
 0x5d1   :  { %2049 = vmatpush3.msra.mxu1 %v2445_v8 }
 0x5d2   :  { %2050 = vmatprep.subr.mxu1 %v2200_v4  ;;  %v1274_v61 = vld [vmem:[#allocation2 + $0x20] sm:$0xff] }
 0x5d3   :  { %2051 = vmatpush3.msra.mxu1 %v2451_v9 }
 0x5d4   :  { %2052 = vmatprep.subr.mxu1 %v2200_v4 }
 0x5d5   :  { %2053 = vmatpush3.msra.mxu1 %v2458_v10 }
 0x5d6   :  { %2054 = vmatprep.subr.mxu1 %v2200_v4 }
 0x5d7   :  { %2055 = vmatpush3.msra.mxu1 %v2465_v11 }
 0x5d8   :  { %2070 = vmatprep.subr.mxu1 %v2200_v4 }
 0x687   :  { %v803_v32 = vpop.f32.mrf.mxu1 }
 0x688   :  { %v807_v33 = vadd.f32 %v803_v32, %v733_v31 }
 0x689   :  { %v2016_v34 = vpop.f32.mrf.mxu1 }
 0x68a   :  { %2160 = vtanh.f32 %v807_v33 }
 0x68f   :  { %v1036_v36 = vpop.f32.mrf.mxu1 }
 0x690   :  { %v1040_v37 = vadd.f32 %v1036_v36, %v969_v35 }
 0x691   :  { %v2047_v38 = vpop.f32.mrf.mxu1 }
 0x692   :  { %2162 = vtanh.f32 %v1040_v37 }
 0x697   :  { %v2161_v39 = vpop.eup %2160 }
 0x698   :  { %809 = vst.msk [vmem:[#allocation2 + $0x38] sm:$0xff] %vm181_vm3, %v2161_v39 }
 0x69f   :  { %v2163_v40 = vpop.eup %2162  ;;  %v817_v41 = vld [vmem:[#allocation2 + $0x38] sm:$0xff] }
 0x6a0   :  { %1042 = vst.msk [vmem:[#allocation2] sm:$0xff] %vm181_vm3, %v2163_v40  ;;  %2057 = vmatmul.mubr.msk.f32.vlgmr.msra.gmra.mxu1 %vm181_vm3, %v2163_v40  ;;  %2035 = vmatmul.mubr.msk.f32.gmra.mxu0 %vm181_vm3, %v817_v41 }
 0x6a1   :  { %2067 = vmatprep.mubr.msk.f32.mxu0 %vm2201_vm2, %v2200_v4  ;;  %2071 = vmatpush3.msra.mxu1 %v2445_v8 }
 0x6a2   :  { %2072 = vmatprep.subr.mxu1 %v2200_v4  ;;  %2078 = vmatprep.mubr.msk.f32.mxu1 %vm2201_vm2, %v2200_v4 }
 0x6a3   :  { %2073 = vmatpush3.msra.mxu1 %v2451_v9 }
 0x6a4   :  { %2074 = vmatprep.subr.mxu1 %v2200_v4 }
 0x6a5   :  { %2075 = vmatpush3.msra.mxu1 %v2458_v10 }
 0x6a6   :  { %2076 = vmatprep.subr.mxu1 %v2200_v4 }
 0x6a7   :  { %2077 = vmatpush3.msra.mxu1 %v2465_v11 }
 0x6a8   :  { %2092 = vmatprep.subr.mxu1 %v2200_v4 }
 0x760   :  { %v1113_v43 = vpop.f32.mrf.mxu1  ;;  %v2036_v44 = vpop.f32.mrf.mxu0 }
 0x761   :  { %v1117_v45 = vadd.f32 %v1113_v43, %v1043_v42  ;;  %v953_v46 = vadd.f32 %v2036_v44, %v2473_v16 }
 0x762   :  { %v2058_v47 = vpop.f32.mrf.mxu1  ;;  %v947_v48 = vpop.f32.mrf.mxu0 }
 0x763   :  { %2164 = vtanh.f32 %v1117_v45  ;;  %963 = vst.msk [vmem:[#allocation2 + $0x38] sm:$0xff] %vm181_vm3, %v953_v46  ;;  %v948_v49 = vadd.f32 %v2473_v16, %v947_v48  ;;  %v1582_v16 = vld [vmem:[%s2625_s5] sm:$0xff] }
 0x765   :  { %962 = vst.msk [vmem:[#allocation2 + $0x30] sm:$0xff] %vm181_vm3, %v948_v49 }
 0x76a   :  { %v1505_v18 = vld [vmem:[#allocation2 + $0x38] sm:$0xff] }
 0x770   :  { %v2165_v50 = vpop.eup %2164 }
 0x771   :  { %1119 = vst.msk [vmem:[#allocation2 + $0x8] sm:$0xff] %vm181_vm3, %v2165_v50  ;;  %2068 = vmatmul.mubr.msk.f32.vlgmr.msra.gmra.mxu0 %vm181_vm3, %v2165_v50 }
 0x772   :  { %2082 = vmatpush3.msra.mxu0 %v2445_v8  ;;  %2089 = vmatprep.mubr.msk.f32.mxu0 %vm2201_vm2, %v2200_v4 }
 0x773   :  { %2083 = vmatprep.subr.mxu0 %v2200_v4 }
 0x774   :  { %2084 = vmatpush3.msra.mxu0 %v2451_v9 }
 0x775   :  { %2085 = vmatprep.subr.mxu0 %v2200_v4 }
 0x776   :  { %2086 = vmatpush3.msra.mxu0 %v2458_v10 }
 0x777   :  { %2087 = vmatprep.subr.mxu0 %v2200_v4 }
 0x778   :  { %2088 = vmatpush3.msra.mxu0 %v2465_v11 }
 0x779   :  { %2103 = vmatprep.subr.mxu0 %v2200_v4 }
 0x831   :  { %v1190_v52 = vpop.f32.mrf.mxu0 }
 0x832   :  { %v1194_v53 = vadd.f32 %v1190_v52, %v1120_v51 }
 0x833   :  { %v2069_v54 = vpop.f32.mrf.mxu0 }
 0x834   :  { %2166 = vtanh.f32 %v1194_v53 }
 0x841   :  { %v2167_v55 = vpop.eup %2166 }
 0x842   :  { %1196 = vst.msk [vmem:[#allocation2 + $0x10] sm:$0xff] %vm181_vm3, %v2167_v55  ;;  %2079 = vmatmul.mubr.msk.f32.vlgmr.msra.gmra.mxu1 %vm181_vm3, %v2167_v55 }
 0x843   :  { %2093 = vmatpush3.msra.mxu1 %v2445_v8  ;;  %2100 = vmatprep.mubr.msk.f32.mxu1 %vm2201_vm2, %v2200_v4 }
 0x844   :  { %2094 = vmatprep.subr.mxu1 %v2200_v4 }
 0x845   :  { %2095 = vmatpush3.msra.mxu1 %v2451_v9 }
 0x846   :  { %2096 = vmatprep.subr.mxu1 %v2200_v4 }
 0x847   :  { %2097 = vmatpush3.msra.mxu1 %v2458_v10 }
 0x848   :  { %2098 = vmatprep.subr.mxu1 %v2200_v4 }
 0x849   :  { %2099 = vmatpush3.msra.mxu1 %v2465_v11 }
 0x84a   :  { %2114 = vmatprep.subr.mxu1 %v2200_v4 }
 0x902   :  { %v1267_v57 = vpop.f32.mrf.mxu1 }
 0x903   :  { %v1271_v58 = vadd.f32 %v1267_v57, %v1197_v56 }
 0x904   :  { %v2080_v59 = vpop.f32.mrf.mxu1 }
 0x905   :  { %2168 = vtanh.f32 %v1271_v58 }
 0x912   :  { %v2169_v60 = vpop.eup %2168 }
 0x913   :  { %1273 = vst.msk [vmem:[#allocation2 + $0x18] sm:$0xff] %vm181_vm3, %v2169_v60  ;;  %2090 = vmatmul.mubr.msk.f32.vlgmr.msra.gmra.mxu0 %vm181_vm3, %v2169_v60 }
 0x914   :  { %2104 = vmatpush3.msra.mxu0 %v2445_v8  ;;  %2111 = vmatprep.mubr.msk.f32.mxu0 %vm2201_vm2, %v2200_v4 }
 0x915   :  { %2105 = vmatprep.subr.mxu0 %v2200_v4 }
 0x916   :  { %2106 = vmatpush3.msra.mxu0 %v2451_v9 }
 0x917   :  { %2107 = vmatprep.subr.mxu0 %v2200_v4 }
 0x918   :  { %2108 = vmatpush3.msra.mxu0 %v2458_v10 }
 0x919   :  { %2109 = vmatprep.subr.mxu0 %v2200_v4 }
 0x91a   :  { %2110 = vmatpush3.msra.mxu0 %v2465_v11 }
 0x91b   :  { %2125 = vmatprep.subr.mxu0 %v2200_v4 }
 0x9d3   :  { %v1344_v62 = vpop.f32.mrf.mxu0 }
 0x9d4   :  { %v1348_v63 = vadd.f32 %v1344_v62, %v1274_v61 }
 0x9d5   :  { %v2091_v0 = vpop.f32.mrf.mxu0 }
 0x9d6   :  { %2170 = vtanh.f32 %v1348_v63 }
 0x9e3   :  { %v2171_v1 = vpop.eup %2170 }
 0x9e4   :  { %1350 = vst.msk [vmem:[#allocation2 + $0x20] sm:$0xff] %vm181_vm3, %v2171_v1  ;;  %2101 = vmatmul.mubr.msk.f32.vlgmr.msra.gmra.mxu1 %vm181_vm3, %v2171_v1 }
 0x9e5   :  { %2115 = vmatpush3.msra.mxu1 %v2445_v8  ;;  %2122 = vmatprep.mubr.msk.f32.mxu1 %vm2201_vm2, %v2200_v4  ;;  %v1428_v8 = vld [vmem:[#allocation2 + $0x30] sm:$0xff] }
 0x9e6   :  { %2116 = vmatprep.subr.mxu1 %v2200_v4 }
 0x9e7   :  { %2117 = vmatpush3.msra.mxu1 %v2451_v9 }
 0x9e8   :  { %2118 = vmatprep.subr.mxu1 %v2200_v4 }
 0x9e9   :  { %2119 = vmatpush3.msra.mxu1 %v2458_v10 }
 0x9ea   :  { %2120 = vmatprep.subr.mxu1 %v2200_v4 }
 0x9eb   :  { %2121 = vmatpush3.msra.mxu1 %v2465_v11 }
 0x9ec   :  { %2136 = vmatprep.subr.mxu1 %v2200_v4 }
 0xaa4   :  { %v1421_v3 = vpop.f32.mrf.mxu1 }
 0xaa5   :  { %v1425_v5 = vadd.f32 %v1421_v3, %v1351_v2 }
 0xaa6   :  { %v2102_v6 = vpop.f32.mrf.mxu1 }
 0xaa7   :  { %2172 = vtanh.f32 %v1425_v5 }
 0xab4   :  { %v2173_v7 = vpop.eup %2172 }
 0xab5   :  { %1427 = vst.msk [vmem:[#allocation2 + $0x28] sm:$0xff] %vm181_vm3, %v2173_v7  ;;  %2112 = vmatmul.mubr.msk.f32.vlgmr.msra.gmra.mxu0 %vm181_vm3, %v2173_v7 }
 0xab6   :  { %2133 = vmatprep.mubr.msk.f32.mxu0 %vm2201_vm2, %v2200_v4  ;;  %2126 = vmatpush3.msra.mxu0 %v1585_v13 }
 0xab7   :  { %2127 = vmatprep.subr.mxu0 %v2200_v4 }
 0xab8   :  { %2128 = vmatpush3.msra.mxu0 %v1584_v14 }
 0xab9   :  { %2129 = vmatprep.subr.mxu0 %v2200_v4 }
 0xaba   :  { %2130 = vmatpush3.msra.mxu0 %v1583_v15 }
 0xabb   :  { %2131 = vmatprep.subr.mxu0 %v2200_v4 }
 0xabc   :  { %2132 = vmatpush3.msra.mxu0 %v1582_v16 }
 0xb75   :  { %v1498_v9 = vpop.f32.mrf.mxu0 }
 0xb76   :  { %v1502_v10 = vadd.f32 %v1498_v9, %v1428_v8 }
 0xb77   :  { %v2113_v12 = vpop.f32.mrf.mxu0 }
 0xb78   :  { %2174 = vtanh.f32 %v1502_v10 }
 0xb85   :  { %v2175_v11 = vpop.eup %2174 }
 0xb86   :  { %1504 = vst.msk [vmem:[#allocation2 + $0x30] sm:$0xff] %vm181_vm3, %v2175_v11  ;;  %2123 = vmatmul.mubr.msk.f32.vlgmr.msra.gmra.mxu1 %vm181_vm3, %v2175_v11 }
 0xb87   :  { %2140 = vmatprep.mubr.msk.f32.mxu1 %vm2201_vm2, %v2200_v4  ;;  %2137 = vmatpush3.msra.mxu1 %v1667_v17 }
 0xb88   :  { %2138 = vmatprep.subr.mxu1 %v2200_v4 }
 0xb89   :  { %2139 = vmatpush3.msra.mxu1 %v1666_v23 }
 0xc46   :  { %v1575_v19 = vpop.f32.mrf.mxu1 }
 0xc47   :  { %v1579_v20 = vadd.f32 %v1575_v19, %v1505_v18 }
 0xc48   :  { %v2124_v21 = vpop.f32.mrf.mxu1 }
 0xc49   :  { %2176 = vtanh.f32 %v1579_v20 }
 0xc56   :  { %v2177_v22 = vpop.eup %2176 }
 0xc57   :  { %1581 = vst.msk [vmem:[#allocation2 + $0x38] sm:$0xff] %vm181_vm3, %v2177_v22  ;;  %2134 = vmatmul.mubr.msk.f32.vlgmr.msra.gmra.mxu0 %vm181_vm3, %v2177_v22 }
 0xd17   :  { %v1662_v4 = vpop.f32.mrf.mxu0 }
 0xd18   :  { %v1663_v25 = vadd.f32 %v1802_v24, %v1662_v4 }
 0xd19   :  { %v2135_v26 = vpop.f32.mrf.mxu0 }
 0xd1a   :  { %2141 = vmatmul.mubr.msk.f32.vlgmr.msra.gmra.mxu1 %vm1675_vm4, %v1663_v25 }
 0xdda   :  { %v1745_v28 = vpop.f32.mrf.mxu1 }
 0xddb   :  { %v1746_v29 = vadd.f32 %v1804_v27, %v1745_v28 }
 0xddc   :  { %v2142_v30 = vpop.f32.mrf.mxu1 }
 0xddd   :  { %1750 = vst.msk [vmem:[#allocation3] sm:$0xff] %vm1749_vm5, %v1746_v29 }
 0xdde   :  { %2189 = shalt.err (!%p2186_p4)
}
 0xddf   :  { %1760 = dma.vmem_to_hbm [thread:$0]  %s1758_s2, 128, %s2629_s9, [#allocation4]  }
 0xde0   :  { %2198 = dma.done.wait [#allocation4], 128  }
 0xde1   :  { %2199 = vsyncadd [#allocation4], 4294967168 }
 0xde2   :  { %1764 = vsyncpa [#allocation4], 1 }

</bundles_post_ra>
